<compile_context>
chip_gen: v5e
topology: v5e:2x2
jax: 0.10.0
libtpu: 0.0.40
codegen_flags: <defaults>
</compile_context>

<pallas_src>
import functools

import jax
import jax.numpy as jnp
from jax.experimental import pallas as pl
from jax.experimental.pallas import tpu as pltpu

EPS = 1e-5               # nn.LayerNorm default
_LANES = 128
_SUBLANES = 8

_DATA_BLOCK_TARGET = 4 << 20      # ~4 MiB per-step data (85%+ of HBM roofline)
_PARAM_SINGLE_BUF_MIN = 1 << 20   # only single-buffer w/b when it saves >=1 MiB
_RSPLIT_MIN_BYTES = 2 << 20       # stream batch-1 slabs bigger than this


# ---------------------------------------------------------------------------
# Kernels
# ---------------------------------------------------------------------------

def _fused_f32(x_refs):
    """Elementwise sum of the (optional) list inputs, in f32 (fused in-kernel)."""
    v = x_refs[0][...].astype(jnp.float32)
    for r in x_refs[1:]:
        v = v + r[...].astype(jnp.float32)
    return v


def _ln2d_whole_kernel(*refs, eps, inv_n, num_inputs):
    """Whole-slab path.  refs = (x_0..x_{k-1}, w, b, out).

    x_i / out blocks: (Bb, R, 128); w / b blocks: (R, 128), already f32.
    Zero-padding lanes (if any) do not perturb the sums; inv_n = 1/(F*T*d_in).
    """
    x_refs = refs[:num_inputs]
    w_ref = refs[num_inputs]
    b_ref = refs[num_inputs + 1]
    o_ref = refs[num_inputs + 2]

    # Single-pass statistics per batch element with f32 accumulation.  The
    # fused sum for the normalize expression is recomputed from the refs
    # (separate expression) rather than held live across the reductions, so
    # the scheduler can stream it instead of pinning a slab-sized f32 temp.
    xs = _fused_f32(x_refs)
    s1 = jnp.sum(xs, axis=(1, 2), keepdims=True)        # (Bb, 1, 1)
    s2 = jnp.sum(xs * xs, axis=(1, 2), keepdims=True)   # (Bb, 1, 1)
    mean = s1 * inv_n
    var = jnp.maximum(s2 * inv_n - mean * mean, 0.0)     # biased variance (torch)
    inv = jax.lax.rsqrt(var + eps)

    w = w_ref[...][None]                                 # (1, R, 128), f32
    b = b_ref[...][None]
    o_ref[...] = ((_fused_f32(x_refs) - mean) * inv * w + b).astype(o_ref.dtype)


def _ln2d_rsplit_kernel(*refs, eps, inv_n, num_inputs):
    """Streamed two-pass path.  grid = (B, 2, R // Rb).

    Phase p=0 accumulates per-batch s1/s2 into VMEM scratch over the R chunks;
    phase p=1 re-reads each chunk, normalizes and writes it out.
    refs = (x_0..x_{k-1}, w, b, out, s1_scratch, s2_scratch).
    """
    x_refs = refs[:num_inputs]
    w_ref = refs[num_inputs]
    b_ref = refs[num_inputs + 1]
    o_ref = refs[num_inputs + 2]
    s1_ref = refs[num_inputs + 3]
    s2_ref = refs[num_inputs + 4]

    p = pl.program_id(1)
    r = pl.program_id(2)

    @pl.when(jnp.logical_and(p == 0, r == 0))
    def _():
        s1_ref[...] = jnp.zeros_like(s1_ref)
        s2_ref[...] = jnp.zeros_like(s2_ref)

    x = _fused_f32(x_refs)                               # (1, Rb, 128), f32

    @pl.when(p == 0)
    def _():
        s1_ref[...] += jnp.sum(x, axis=(1, 2), keepdims=True)
        s2_ref[...] += jnp.sum(x * x, axis=(1, 2), keepdims=True)

    @pl.when(p == 1)
    def _():
        mean = s1_ref[...] * inv_n
        var = jnp.maximum(s2_ref[...] * inv_n - mean * mean, 0.0)
        inv = jax.lax.rsqrt(var + eps)
        w = w_ref[...][None]
        b = b_ref[...][None]
        o_ref[...] = ((x - mean) * inv * w + b).astype(o_ref.dtype)


# ---------------------------------------------------------------------------
# Sizing / capability helpers
# ---------------------------------------------------------------------------

_VMEM_CAP = None
_BUFFERED_OK = None


def _vmem_cap_bytes():
    """~75% of this generation's physical VMEM (48 MiB v7x, ~96 MiB v5e/v6e)."""
    global _VMEM_CAP
    if _VMEM_CAP is None:
        try:
            phys = int(pltpu.get_tpu_info().vmem_capacity_bytes)
        except Exception:
            phys = 64 << 20      # conservative default: v7x has the smallest VMEM
        _VMEM_CAP = (phys * 3) // 4
    return _VMEM_CAP


def _buffered_params_supported():
    """One-time tiny probe: can this JAX/Mosaic lower pipeline_mode=pl.Buffered(1)?"""
    global _BUFFERED_OK
    if _BUFFERED_OK is not None:
        return _BUFFERED_OK
    if not hasattr(pl, "Buffered"):
        _BUFFERED_OK = False
        return False

    def _copy(x_ref, o_ref):
        o_ref[...] = x_ref[...]

    try:
        fn = pl.pallas_call(
            _copy,
            out_shape=jax.ShapeDtypeStruct((_SUBLANES, _LANES), jnp.float32),
            grid_spec=pltpu.PrefetchScalarGridSpec(
                num_scalar_prefetch=0,
                grid=(1,),
                in_specs=[pl.BlockSpec((_SUBLANES, _LANES), lambda i: (0, 0),
                                       pipeline_mode=pl.Buffered(1))],
                out_specs=pl.BlockSpec((_SUBLANES, _LANES), lambda i: (0, 0))))
        jax.block_until_ready(fn(jnp.zeros((_SUBLANES, _LANES), jnp.float32)))
        _BUFFERED_OK = True
    except Exception:   # isolated capability probe only; real kernel is not masked
        _BUFFERED_OK = False
    return _BUFFERED_OK


def _choose_batch_block(B, per_batch_bytes, target_bytes=_DATA_BLOCK_TARGET):
    """Pick Bb (divisor of B).  Priorities: per-step data <= target (Bb=1 always
    allowed), then >=4 grid steps, then an even step count (two v7x TensorCores),
    then the largest block (amortizes ~0.35us/step grid overhead)."""
    best_d, best_key = 1, None
    for d in range(1, B + 1):
        if B % d:
            continue
        if d > 1 and d * per_batch_bytes > target_bytes:
            continue
        steps = B // d
        key = (steps >= 4 or steps == B,      # >=4 steps unless B itself is smaller
               steps % 2 == 0 or steps == 1,  # even steps for megacore
               d)                             # bigger block
        if best_key is None or key > best_key:
            best_key, best_d = key, d
    return best_d


def _choose_r_block(R, bytes_per_row, target_bytes=_DATA_BLOCK_TARGET):
    """Largest Rb that is a multiple of 8, divides R, leaves >=2 chunks, and keeps
    the per-step chunk under target.  None if no such Rb exists."""
    if R % _SUBLANES:
        return None
    best = None
    for rb in range(_SUBLANES, R // 2 + 1, _SUBLANES):
        if R % rb:
            continue
        if rb * bytes_per_row > target_bytes:
            continue
        best = rb
    return best


def _whole_slab_vmem_bytes(in_itemsizes, out_itemsize, Bb, padded, single_buf_params):
    blk = Bb * padded
    est = sum(2 * blk * isz for isz in in_itemsizes)          # double-buffered inputs
    est += 2 * blk * out_itemsize                             # double-buffered output
    est += (1 if single_buf_params else 2) * 2 * padded * 4   # w + b (f32)
    est += blk * 4                                            # f32 working-slab headroom
    return est


def _cost_estimate(num_inputs, B, padded, in_itemsizes, out_itemsize,
                   reads_inputs_twice):
    elems = B * padded
    flops = elems * (2 * num_inputs + 7)
    bytes_in = elems * sum(in_itemsizes) * (2 if reads_inputs_twice else 1)
    bytes_par = 2 * padded * 4
    return pl.CostEstimate(flops=int(flops), transcendentals=int(B),
                           bytes_accessed=int(bytes_in + elems * out_itemsize
                                              + bytes_par))


# ---------------------------------------------------------------------------
# pallas_call builders
# ---------------------------------------------------------------------------

def _build_whole_slab_call(num_inputs, B, Bb, R, padded, in_dtypes, out_dtype,
                           eps, n_valid, single_buf_params, vmem_cap, cost):
    kernel = functools.partial(_ln2d_whole_kernel, eps=eps,
                               inv_n=float(1.0 / n_valid), num_inputs=num_inputs)
    data_block = (Bb, R, _LANES)
    param_kwargs = {}
    if single_buf_params:
        # Constant index_map -> never re-DMA'd; single buffer halves param VMEM.
        param_kwargs = dict(pipeline_mode=pl.Buffered(1))

    x_specs = [pl.BlockSpec(data_block, lambda i: (i, 0, 0))
               for _ in range(num_inputs)]
    w_spec = pl.BlockSpec((R, _LANES), lambda i: (0, 0), **param_kwargs)
    b_spec = pl.BlockSpec((R, _LANES), lambda i: (0, 0), **param_kwargs)
    out_spec = pl.BlockSpec(data_block, lambda i: (i, 0, 0))

    in_itemsizes = [jnp.dtype(dt).itemsize for dt in in_dtypes]
    est = _whole_slab_vmem_bytes(in_itemsizes, jnp.dtype(out_dtype).itemsize,
                                 Bb, padded, single_buf_params)
    vmem_limit = int(min(vmem_cap, max(16 << 20, int(1.25 * est))))

    return pl.pallas_call(
        kernel,
        out_shape=jax.ShapeDtypeStruct((B, R, _LANES), out_dtype),
        grid_spec=pltpu.PrefetchScalarGridSpec(
            num_scalar_prefetch=0,
            grid=(B // Bb,),
            in_specs=x_specs + [w_spec, b_spec],
            out_specs=out_spec),
        compiler_params=pltpu.CompilerParams(
            dimension_semantics=("parallel",),
            vmem_limit_bytes=vmem_limit),
        cost_estimate=cost,
    )


def _build_rsplit_call(num_inputs, B, R, Rb, padded, in_dtypes, out_dtype,
                       eps, n_valid, vmem_cap, cost):
    kernel = functools.partial(_ln2d_rsplit_kernel, eps=eps,
                               inv_n=float(1.0 / n_valid), num_inputs=num_inputs)
    nr = R // Rb
    x_specs = [pl.BlockSpec((1, Rb, _LANES), lambda i, p, r: (i, r, 0))
               for _ in range(num_inputs)]
    # w/b are only read in phase 1; parking them at block 0 during phase 0 avoids
    # re-DMAing unused parameter chunks during the stats pass.
    w_spec = pl.BlockSpec((Rb, _LANES), lambda i, p, r: (r * p, 0))
    b_spec = pl.BlockSpec((Rb, _LANES), lambda i, p, r: (r * p, 0))
    # Phase 0 never writes the output; keeping its block index parked at r=0 means
    # no (garbage) writeback happens before phase 1 overwrites that block.
    out_spec = pl.BlockSpec((1, Rb, _LANES), lambda i, p, r: (i, r * p, 0))

    blk = Rb * _LANES
    est = sum(2 * blk * jnp.dtype(dt).itemsize for dt in in_dtypes)
    est += 2 * blk * jnp.dtype(out_dtype).itemsize
    est += 2 * 2 * blk * 4        # w + b chunks, double-buffered, f32
    est += blk * 4                # f32 working-chunk headroom
    vmem_limit = int(min(vmem_cap, max(16 << 20, int(1.5 * est))))

    return pl.pallas_call(
        kernel,
        out_shape=jax.ShapeDtypeStruct((B, R, _LANES), out_dtype),
        grid_spec=pltpu.PrefetchScalarGridSpec(
            num_scalar_prefetch=0,
            grid=(B, 2, nr),
            in_specs=x_specs + [w_spec, b_spec],
            out_specs=out_spec,
            scratch_shapes=[pltpu.VMEM((1, 1, 1), jnp.float32),
                            pltpu.VMEM((1, 1, 1), jnp.float32)]),
        compiler_params=pltpu.CompilerParams(
            dimension_semantics=("parallel", "arbitrary", "arbitrary"),
            vmem_limit_bytes=vmem_limit),
        cost_estimate=cost,
    )


# ---------------------------------------------------------------------------
# Public wrapper (LayerNorm2d.forward)
# ---------------------------------------------------------------------------

def layernorm2d_module(X, weight, bias, *, eps=EPS, force_r_split=False):
    """LayerNorm2d.forward: X is a (B, F, T, d_in) array or a list of such arrays
    (summed elementwise, fused into the kernel); weight/bias: (F, T, d_in)."""
    xs = list(X) if isinstance(X, (list, tuple)) else [X]
    B, F, T, D = xs[0].shape
    total = F * T * D

    # Lane-dense layout: flatten the normalized dims onto (R, 128).  Pad only if
    # F*T*d_in is not a multiple of 128 (R need NOT be a multiple of 8: the
    # block's last two dims equal the full array dims).
    rem = total % _LANES
    padded = total if rem == 0 else total + (_LANES - rem)
    R = padded // _LANES
    # TODO(synk): for ragged totals, mask the final partial lane group in-kernel
    # instead of this physical zero-pad (extra HBM pass on inputs and output).

    def _to_lane_dense(a, lead_batch):
        a2 = a.reshape((B, total) if lead_batch else (total,))
        if padded != total:
            pad = [(0, 0), (0, padded - total)] if lead_batch else [(0, padded - total)]
            a2 = jnp.pad(a2, pad)
        return a2.reshape((B, R, _LANES) if lead_batch else (R, _LANES))

    xs3d = [_to_lane_dense(x, True) for x in xs]
    # Upcast the affine params to f32 once here instead of per grid step in-kernel.
    w2d = _to_lane_dense(weight.astype(jnp.float32), False)
    b2d = _to_lane_dense(bias.astype(jnp.float32), False)

    out_dtype = xs[0].dtype              # keep caller dtype; math is f32 in-kernel
    in_dtypes = [x.dtype for x in xs]
    in_itemsizes = [jnp.dtype(dt).itemsize for dt in in_dtypes]
    out_itemsize = jnp.dtype(out_dtype).itemsize
    bytes_per_row = _LANES * (sum(in_itemsizes) + out_itemsize)
    per_batch_bytes = padded * (sum(in_itemsizes) + out_itemsize)
    vmem_cap = _vmem_cap_bytes()

    Bb = _choose_batch_block(B, per_batch_bytes)
    steps = B // Bb
    single_buf = (2 * padded * 4 >= _PARAM_SINGLE_BUF_MIN
                  and _buffered_params_supported())
    whole_est = _whole_slab_vmem_bytes(in_itemsizes, out_itemsize, Bb, padded,
                                       single_buf)

    Rb = _choose_r_block(R, bytes_per_row)
    use_rsplit = Rb is not None and (
        force_r_split
        or whole_est > vmem_cap                                   # slab too big
        or (steps == 1 and per_batch_bytes >= _RSPLIT_MIN_BYTES)  # batch=1: stream
    )
    # TODO(synk): if the slab exceeds the VMEM budget and no valid Rb exists
    # (R not a multiple of 8), we still fall back to the whole-slab path.

    num_inputs = len(xs)
    cost = _cost_estimate(num_inputs, B, padded, in_itemsizes, out_itemsize,
                          reads_inputs_twice=use_rsplit)
    args = (*xs3d, w2d, b2d)

    if use_rsplit:
        fn = _build_rsplit_call(num_inputs, B, R, Rb, padded, in_dtypes,
                                out_dtype, eps, total, vmem_cap, cost)
    else:
        fn = _build_whole_slab_call(num_inputs, B, Bb, R, padded, in_dtypes,
                                    out_dtype, eps, total, single_buf,
                                    vmem_cap, cost)
    out3d = fn(*args)

    if padded != total:
        return out3d.reshape(B, padded)[:, :total].reshape(B, F, T, D)
    return out3d.reshape(B, F, T, D)


# ---------------------------------------------------------------------------
# Pure-JAX reference + self-test
# ---------------------------------------------------------------------------

def _reference(X, weight, bias, eps=EPS):
    if isinstance(X, (list, tuple)):
        X = functools.reduce(lambda a, b: a + b, X)
    x32 = X.astype(jnp.float32)
    mean = jnp.mean(x32, axis=(1, 2, 3), keepdims=True)
    var = jnp.mean((x32 - mean) ** 2, axis=(1, 2, 3), keepdims=True)
    y = (x32 - mean) * jax.lax.rsqrt(var + eps)
    return (y * weight[None] + bias[None]).astype(X.dtype)


if __name__ == "__main__":
    key = jax.random.PRNGKey(0)
    k1, k2, k3, k4, k5, k6 = jax.random.split(key, 6)

    # Case 1: list input (fused elementwise sum); B=2, F=4, T=8, d_in=32.
    B, F, T, D = 2, 4, 8, 32
    x1 = jax.random.normal(k1, (B, F, T, D), dtype=jnp.float32)
    x2 = jax.random.normal(k2, (B, F, T, D), dtype=jnp.float32)
    w = jnp.ones((F, T, D), jnp.float32) + 0.1 * jax.random.normal(k3, (F, T, D))
    b = 0.1 * jax.random.normal(k4, (F, T, D), dtype=jnp.float32)

    out = jax.block_until_ready(layernorm2d_module([x1, x2], w, b))
    ref = _reference([x1, x2], w, b)
    assert out.shape == (B, F, T, D)
    assert jnp.allclose(out, ref, atol=1e-4, rtol=1e-4)

    # Case 2: single-array input (whole-slab path, no padding).
    out = jax.block_until_ready(layernorm2d_module(x1, w, b))
    ref = _reference(x1, w, b)
    assert jnp.allclose(out, ref, atol=1e-4, rtol=1e-4)

    # Case 3: F*T*d_in multiple of 128 but NOT of 1024 (R=3) -> no pad/unpad.
    F3, T3, D3 = 3, 8, 16
    x3 = jax.random.normal(k5, (B, F3, T3, D3), dtype=jnp.float32)
    w3 = jnp.ones((F3, T3, D3), jnp.float32)
    b3 = jnp.zeros((F3, T3, D3), jnp.float32)
    out = jax.block_until_ready(layernorm2d_module(x3, w3, b3))
    ref = _reference(x3, w3, b3)
    assert jnp.allclose(out, ref, atol=1e-4, rtol=1e-4)

    # Case 4: batch=1 streamed two-pass R-split path (stats pass + normalize).
    F4, T4, D4 = 4, 8, 128     # total=4096 -> R=32 -> Rb=16, 2 chunks per phase
    x4 = jax.random.normal(k6, (1, F4, T4, D4), dtype=jnp.float32)
    w4 = jnp.ones((F4, T4, D4), jnp.float32) * 1.05
    b4 = jnp.full((F4, T4, D4), -0.05, jnp.float32)
    out = jax.block_until_ready(layernorm2d_module(x4, w4, b4, force_r_split=True))
    ref = _reference(x4, w4, b4)
    assert out.shape == (1, F4, T4, D4)
    assert jnp.allclose(out, ref, atol=1e-4, rtol=1e-4)

    print("KERNEL_OK")
</pallas_src>

<mosaic_0001>
module attributes {stable_mosaic.version = 11 : i64} {
  func.func @_ln2d_whole_kernel(%arg0: i32, %arg1: memref<1x8x128xf32, #tpu.memory_space<vmem>>, %arg2: memref<1x8x128xf32, #tpu.memory_space<vmem>>, %arg3: memref<8x128xf32, #tpu.memory_space<vmem>>, %arg4: memref<8x128xf32, #tpu.memory_space<vmem>>, %arg5: memref<1x8x128xf32, #tpu.memory_space<vmem>>) attributes {dimension_semantics = [#tpu.dimension_semantics<parallel>], iteration_bounds = array<i64: 2>, scalar_prefetch = 0 : i64, scratch_operands = 0 : i64, tpu.core_type = #tpu.core_type<tc>, window_params = [{transform_indices = @transform_0, window_bounds = array<i64: 1, 8, 128>}, {transform_indices = @transform_1, window_bounds = array<i64: 1, 8, 128>}, {pipeline_mode = #tpu.pipeline_mode<synchronous>, transform_indices = @transform_2, window_bounds = array<i64: 8, 128>}, {pipeline_mode = #tpu.pipeline_mode<synchronous>, transform_indices = @transform_3, window_bounds = array<i64: 8, 128>}, {transform_indices = @transform_4, window_bounds = array<i64: 1, 8, 128>}]} {
    %c0 = arith.constant 0 : index
    %c0_0 = arith.constant 0 : index
    %c0_1 = arith.constant 0 : index
    %0 = vector.load %arg1[%c0, %c0_0, %c0_1] : memref<1x8x128xf32, #tpu.memory_space<vmem>>, vector<1x8x128xf32>
    %c0_2 = arith.constant 0 : index
    %c0_3 = arith.constant 0 : index
    %c0_4 = arith.constant 0 : index
    %1 = vector.load %arg2[%c0_2, %c0_3, %c0_4] : memref<1x8x128xf32, #tpu.memory_space<vmem>>, vector<1x8x128xf32>
    %2 = arith.addf %0, %1 : vector<1x8x128xf32>
    %cst = arith.constant dense<0.000000e+00> : vector<1xf32>
    %3 = vector.multi_reduction <add>, %2, %cst [1, 2] : vector<1x8x128xf32> to vector<1xf32>
    %4 = vector.shape_cast %3 : vector<1xf32> to vector<1x1x1xf32>
    %5 = arith.mulf %2, %2 : vector<1x8x128xf32>
    %cst_5 = arith.constant dense<0.000000e+00> : vector<1xf32>
    %6 = vector.multi_reduction <add>, %5, %cst_5 [1, 2] : vector<1x8x128xf32> to vector<1xf32>
    %7 = vector.shape_cast %6 : vector<1xf32> to vector<1x1x1xf32>
    %cst_6 = arith.constant 9.765625E-4 : f32
    %8 = vector.broadcast %cst_6 : f32 to vector<1x1x1xf32>
    %9 = arith.mulf %4, %8 : vector<1x1x1xf32>
    %cst_7 = arith.constant 9.765625E-4 : f32
    %10 = vector.broadcast %cst_7 : f32 to vector<1x1x1xf32>
    %11 = arith.mulf %7, %10 : vector<1x1x1xf32>
    %12 = arith.mulf %9, %9 : vector<1x1x1xf32>
    %13 = arith.subf %11, %12 : vector<1x1x1xf32>
    %cst_8 = arith.constant 0.000000e+00 : f32
    %14 = vector.broadcast %cst_8 : f32 to vector<1x1x1xf32>
    %15 = arith.maximumf %13, %14 : vector<1x1x1xf32>
    %cst_9 = arith.constant 9.99999974E-6 : f32
    %16 = vector.broadcast %cst_9 : f32 to vector<1x1x1xf32>
    %17 = arith.addf %15, %16 : vector<1x1x1xf32>
    %18 = math.rsqrt %17 : vector<1x1x1xf32>
    %c0_10 = arith.constant 0 : index
    %c0_11 = arith.constant 0 : index
    %19 = vector.load %arg3[%c0_10, %c0_11] : memref<8x128xf32, #tpu.memory_space<vmem>>, vector<8x128xf32>
    %20 = vector.shape_cast %19 : vector<8x128xf32> to vector<1x8x128xf32>
    %c0_12 = arith.constant 0 : index
    %c0_13 = arith.constant 0 : index
    %21 = vector.load %arg4[%c0_12, %c0_13] : memref<8x128xf32, #tpu.memory_space<vmem>>, vector<8x128xf32>
    %22 = vector.shape_cast %21 : vector<8x128xf32> to vector<1x8x128xf32>
    %c0_14 = arith.constant 0 : index
    %c0_15 = arith.constant 0 : index
    %c0_16 = arith.constant 0 : index
    %23 = vector.load %arg1[%c0_14, %c0_15, %c0_16] : memref<1x8x128xf32, #tpu.memory_space<vmem>>, vector<1x8x128xf32>
    %c0_17 = arith.constant 0 : index
    %c0_18 = arith.constant 0 : index
    %c0_19 = arith.constant 0 : index
    %24 = vector.load %arg2[%c0_17, %c0_18, %c0_19] : memref<1x8x128xf32, #tpu.memory_space<vmem>>, vector<1x8x128xf32>
    %25 = arith.addf %23, %24 : vector<1x8x128xf32>
    %26 = vector.broadcast %9 : vector<1x1x1xf32> to vector<1x8x128xf32>
    %27 = arith.subf %25, %26 : vector<1x8x128xf32>
    %28 = vector.broadcast %18 : vector<1x1x1xf32> to vector<1x8x128xf32>
    %29 = arith.mulf %27, %28 : vector<1x8x128xf32>
    %30 = arith.mulf %29, %20 : vector<1x8x128xf32>
    %31 = arith.addf %30, %22 : vector<1x8x128xf32>
    %c0_20 = arith.constant 0 : index
    %c0_21 = arith.constant 0 : index
    %c0_22 = arith.constant 0 : index
    %32 = vector.load %arg5[%c0_20, %c0_21, %c0_22] : memref<1x8x128xf32, #tpu.memory_space<vmem>>, vector<1x8x128xf32>
    tpu.vector_store %arg5[%c0_20, %c0_21, %c0_22], %31 {strides = array<i32>} : memref<1x8x128xf32, #tpu.memory_space<vmem>>, vector<1x8x128xf32>,
    return
  }
  func.func @transform_0(%arg0: i32) -> (i32, i32, i32) {
    %c0_i32 = arith.constant 0 : i32
    %c0_i32_0 = arith.constant 0 : i32
    %c0_i32_1 = arith.constant 0 : i32
    return %arg0, %c0_i32, %c0_i32_0 : i32, i32, i32
  }
  func.func @transform_1(%arg0: i32) -> (i32, i32, i32) {
    %c0_i32 = arith.constant 0 : i32
    %c0_i32_0 = arith.constant 0 : i32
    %c0_i32_1 = arith.constant 0 : i32
    return %arg0, %c0_i32, %c0_i32_0 : i32, i32, i32
  }
  func.func @transform_2(%arg0: i32) -> (i32, i32) {
    %c0_i32 = arith.constant 0 : i32
    %c0_i32_0 = arith.constant 0 : i32
    %c0_i32_1 = arith.constant 0 : i32
    return %c0_i32, %c0_i32_0 : i32, i32
  }
  func.func @transform_3(%arg0: i32) -> (i32, i32) {
    %c0_i32 = arith.constant 0 : i32
    %c0_i32_0 = arith.constant 0 : i32
    %c0_i32_1 = arith.constant 0 : i32
    return %c0_i32, %c0_i32_0 : i32, i32
  }
  func.func @transform_4(%arg0: i32) -> (i32, i32, i32) {
    %c0_i32 = arith.constant 0 : i32
    %c0_i32_0 = arith.constant 0 : i32
    %c0_i32_1 = arith.constant 0 : i32
    return %arg0, %c0_i32, %c0_i32_0 : i32, i32, i32
  }
}

</mosaic_0001>

<bundles_post_ra>
// kernel: tpu_custom_call.1
= control target key start
LH: loop header
LB: loop body
LE: loop exit
PB: predicated region body
PF: predicated region fallthrough
CT: control target
= control target key end

     0   :  { %s951_s0 = inlined_call_operand.hbm [shape: f32[2,8,128], index: 0, kind: input, shape index: {}]   ;;  %s952_s1 = inlined_call_operand.hbm [shape: f32[2,8,128], index: 1, kind: input, shape index: {}]   ;;  %s953_s2 = inlined_call_operand.hbm [shape: f32[8,128], index: 2, kind: input, shape index: {}]   ;;  %s954_s3 = inlined_call_operand.hbm [shape: f32[8,128], index: 3, kind: input, shape index: {}]   ;;  %s955_s4 = inlined_call_operand.hbm [shape: f32[2,8,128], index: 4, kind: output, shape index: {}]  }
   0x1   :  { %956 = sst [smem:[#allocation17_spill]] %s953_s2 }
   0x2   :  { %957 = sst [smem:[#allocation18_spill]] %s954_s3 }
   0x3   :  { %9 = vsyncpa [#allocation3], 0 }
   0x4   :  { %11 = vsyncpa [#allocation3 + $0x1], 0 }
   0x5   :  { %12 = vsyncpa [#allocation6], 0 }
   0x6   :  { %14 = vsyncpa [#allocation6 + $0x1], 0 }
   0x7   :  { %15 = vsyncpa [#allocation9], 0 }
   0x8   :  { %16 = vsyncpa [#allocation4], 0 }
   0x9   :  { %18 = vsyncpa [#allocation4 + $0x1], 0  ;;  %s774_s15 = smov 0   ;;  %s776_s16 = smov 0  }
   0xa   :  { %s778_s17 = smov 0   ;;  %s780_s18 = smov 0  }
   0xb LB: > { %s795_s19 = sadd.s32 4294967295, %s745_s18   ;;  %s454_s20 = sadd.s32 4294967294, %s745_s18   ;;  %s745_s18 = sphi %s780_s18, %s971_s18   ;;  %s741_s17 = sphi %s778_s17, %s970_s17   ;;  %s737_s16 = sphi %s776_s16, %s969_s16   ;;  %s733_s15 = sphi %s774_s15, %s968_s15  }
   0xc   : > { %p44_p0 = scmp.ne.s32.totalorder %s737_s16, %s733_s15  ;;  %p45_p1 = scmp.eq.s32.totalorder %s795_s19, 0 }
   0xd   : > { %p136_p2 = scmp.eq.s32.totalorder %s795_s19, 1  ;;  %p142_p3 = scmp.eq.s32.totalorder %s454_s20, 1 }
   0xe   : > { %p804_p4 = por %p45_p1, %p44_p0  ;;  %p455_p5 = scmp.ge.s32.totalorder %s745_s18, 1 }
   0xf   : > { %p809_p6 = por %p142_p3, %p44_p0  ;;  %p149_p7 = scmp.lt.s32.totalorder %s745_s18, 3 }
  0x10   : > { %s960_s2 = sld [smem:[#allocation17_spill]]  ;;  %s747_s27 = smov [#allocation7]  }
  0x11   : > { %p817_p8 = pnand %p455_p5, %p149_p7  ;;  %s163_s28 = sshll.u32 %s747_s27, 4  ;;  %s164_s28 = int_to_ptr.vmem [resolvable:$true] %s163_s28 }
  0x12   : > { %s962_s3 = sld [smem:[#allocation18_spill]]  ;;  %s748_s6 = smov [#allocation8]  }
  0x13   : > { %p487_p10 = pneg %p817_p8  ;;  %s175_s7 = sshll.u32 %s748_s6, 4  ;;  %s176_s7 = int_to_ptr.vmem [resolvable:$true] %s175_s7 }
  0x14   : > { %s830_s8 = sadd.s32 1, %s745_s18   ;;  %s31_s9 = sadd.s32 1, %s741_s17 }
  0x15   : > { %p488_p11 = pnand %p487_p10, %p45_p1  ;;  %s28_s10 = ssub.s32 %s745_s18, %s830_s8 }
  0x16   : > { %s161_s25 = sshll.u32 %s960_s2, 4  ;;  %p38_p12 = scmp.ne.s32.totalorder %s741_s17, %s737_s16  ;;  %s162_s25 = int_to_ptr.hbm [resolvable:$true] %s161_s25 }
  0x17   : > { %490 = dma.hbm_to_vmem [thread:$0]  (!%p488_p11), %s162_s25, 128, %s164_s28, [#allocation6]  }
  0x18   : > { %s173_s5 = sshll.u32 %s962_s3, 4  ;;  %p29_p13 = scmp.eq.s32.totalorder %s28_s10, 0  ;;  %s174_s5 = int_to_ptr.hbm [resolvable:$true] %s173_s5 }
  0x19   : > { %493 = dma.hbm_to_vmem [thread:$0]  (!%p488_p11), %s174_s5, 128, %s176_s7, [#allocation9]  }
  0x1a   : > { %p39_p0 = scmp.eq.s32.totalorder %s745_s18, 0  ;;  %p840_p3 = por %p136_p2, %p38_p12 }
  0x1b   : > { %p507_p5 = scmp.lt.s32.totalorder %s745_s18, 2  ;;  %s186_s13 = sand.u32 1, %s741_s17  }
  0x1c   : > { %s846_s12 = scalar_select %p29_p13, %s741_s17, %s31_s9  }
  0x1d   : > { %p40_p7 = por %p39_p0, %p38_p12  ;;  %s849_s14 = sshll.u32 %s186_s13, 3 }
  0x1e   : > { %964 = sst [smem:[#allocation16_spill]] %s846_s12  ;;  %s460_s20 = sshll.u32 %s745_s18, 3 }
  0x1f   : > { %s194_s25 = scalar_lea.hbm %s951_s0, %s460_s20  ;;  %s190_s27 = scalar_lea.vmem [#allocation2], %s849_s14 }
  0x20   : > { %s198_s28 = sshll.u32 %s190_s27, 4  ;;  %s196_s29 = sshll.u32 %s194_s25, 4  ;;  %s199_s28 = int_to_ptr.vmem [resolvable:$true] %s198_s28  ;;  %s197_s29 = int_to_ptr.hbm [resolvable:$true] %s196_s29 }
  0x21   : > { %p856_p2 = pnand %p507_p5, %p40_p7  ;;  %s213_s7 = scalar_lea.hbm %s952_s1, %s460_s20 }
  0x22   : > { %s205_s9 = sand.u32 1, %s745_s18   ;;  %s187_s10 = scalar_lea.sflag [#allocation3], %s186_s13 }
  0x23   : > { %s607_s2 = sshra.s32 %s197_s29, 4  ;;  %p611_p11 = pneg %p856_p2  ;;  %s608_s2 = int_to_ptr.hbm [resolvable:$true] %s607_s2 }
  0x24   : > { %s609_s23 = scalar_lea.hbm %s608_s2, 8  ;;  %s614_s27 = scalar_lea.hbm %s951_s0, 16 }
  0x25   : > { %p610_p10 = scmp.ne.s32.totalorder %s608_s2, %s609_s23  ;;  %p615_p0 = scmp.lt.s32.totalorder %s608_s2, %s951_s0 }
  0x26   : > { %p616_p5 = scmp.lt.s32.totalorder %s614_s27, %s609_s23 }
  0x27   : > { %p612_p12 = pnand %p611_p11, %p610_p10 }
  0x28   : > { %p617_p7 = por %p616_p5, %p615_p0 }
  0x29   : > { %p613_p13 = pneg %p612_p12 }
  0x2b   : > { %p618_p9 = pnand %p617_p7, %p613_p13 }
  0x2d   : > { %621 = shalt.err (!%p618_p9)
}
  0x2e   : > { %497 = dma.hbm_to_vmem [thread:$0]  (!%p856_p2), %s197_s29, 128, %s199_s28, %s187_s10  }
  0x2f   : > { %s215_s13 = sshll.u32 %s213_s7, 4  ;;  %s209_s20 = scalar_lea.vmem [#allocation5], %s849_s14  ;;  %s216_s13 = int_to_ptr.hbm [resolvable:$true] %s215_s13 }
  0x30   : > { %s217_s3 = sshll.u32 %s209_s20, 4  ;;  %s206_s24 = scalar_lea.sflag [#allocation6], %s205_s9  ;;  %s218_s3 = int_to_ptr.vmem [resolvable:$true] %s217_s3 }
  0x31   : > { %s637_s25 = sshra.s32 %s216_s13, 4  ;;  %s644_s27 = scalar_lea.hbm %s952_s1, 16  ;;  %s638_s25 = int_to_ptr.hbm [resolvable:$true] %s637_s25 }
  0x32   : > { %s639_s12 = scalar_lea.hbm %s638_s25, 8  ;;  %p645_p9 = scmp.lt.s32.totalorder %s638_s25, %s952_s1 }
  0x33   : > { %p640_p10 = scmp.ne.s32.totalorder %s638_s25, %s639_s12  ;;  %p646_p0 = scmp.lt.s32.totalorder %s644_s27, %s639_s12 }
  0x35   : > { %p642_p12 = pnand %p640_p10, %p611_p11  ;;  %p647_p5 = por %p646_p0, %p645_p9 }
  0x37   : > { %p643_p13 = pneg %p642_p12 }
  0x39   : > { %p648_p7 = pnand %p647_p5, %p643_p13 }
  0x3b   : > { %651 = shalt.err (!%p648_p7)
}
  0x3c   : > { %500 = dma.hbm_to_vmem [thread:$0]  (!%p856_p2), %s216_s13, 128, %s218_s3, %s206_s24  }
  0x3d   : > { %226 = sbr.rel (%p817_p8) target bundleno = 248 (0xf8), region = 36  ;;  %s892_s14 = sand.u32 (!%p817_p8), 1, %s737_s16  }
  0x3e   : > { %s895_s29 = sshll.u32 (!%p817_p8), %s892_s14, 3  ;;  %s229_s7 = scalar_lea.sflag (!%p817_p8), [#allocation3], %s892_s14 }
  0x3f   : > { %s232_s12 = scalar_lea.vmem (!%p817_p8), [#allocation2], %s895_s29 }
  0x42   : > { %712 = dma.done.wait (%p804_p4), %s229_s7, 128  }
  0x43   : > { %714 = vsyncadd (%p804_p4), %s229_s7, 4294967168  ;;  %s238_s3 = sand.u32 1, %s795_s19   ;;  %s242_s30 = scalar_lea.vmem [#allocation5], %s895_s29 }
  0x44   : > { %s239_s26 = scalar_lea.sflag [#allocation6], %s238_s3 }
  0x45   : > { %716 = dma.done.wait (%p804_p4), %s239_s26, 128  }
  0x46   : > { %718 = vsyncadd (%p804_p4), %s239_s26, 4294967168 }
  0x47   : > { %720 = dma.done.wait (%p45_p1), [#allocation6], 128  }
  0x48   : > { %722 = vsyncadd (%p45_p1), [#allocation6], 4294967168 }
  0x49   : > { %724 = dma.done.wait (%p45_p1), [#allocation9], 128  }
  0x4a   : > { %726 = vsyncadd (%p45_p1), [#allocation9], 4294967168  ;;  %v283_v0 = vld [vmem:[%s232_s12] sm:$0xff]  ;;  %v284_v1 = vld [vmem:[%s242_s30] sm:$0xff]  ;;  %s470_s21 = sshll.u32 %s795_s19, 3  ;;  %s282_s13 = scalar_lea.vmem [#allocation10], %s895_s29 }
  0x4b   : > { %v285_v2 = vadd.f32 %v284_v1, %v283_v0  ;;  %s337_s6 = scalar_lea.hbm %s955_s4, %s470_s21  ;;  %v319_v32 = vld [vmem:[#allocation7] sm:$0xff]  ;;  %v320_v34 = vld [vmem:[#allocation8] sm:$0xff]  ;;  %s339_s20 = sshll.u32 %s282_s13, 4  ;;  %s340_s20 = int_to_ptr.vmem [resolvable:$true] %s339_s20 }
  0x4c   : > { %s341_s24 = sshll.u32 %s337_s6, 4  ;;  %s327_s19 = scalar_lea.sflag [#allocation4], %s892_s14  ;;  %s342_s24 = int_to_ptr.hbm [resolvable:$true] %s341_s24 }
  0x4d   : > { %286 = vadd.xlane.f32.xlu0 %v285_v2  ;;  %v294_v3 = vmul.f32 %v285_v2, %v285_v2  ;;  %s681_s25 = sshra.s32 %s342_s24, 4  ;;  %s687_s5 = scalar_lea.hbm %s955_s4, 16  ;;  %s682_s25 = int_to_ptr.hbm [resolvable:$true] %s681_s25 }
  0x4e   : > { %s683_s2 = scalar_lea.hbm %s682_s25, 8  ;;  %p688_p2 = scmp.lt.s32.totalorder %s682_s25, %s955_s4 }
  0x4f   : > { %p684_p1 = scmp.ne.s32.totalorder %s682_s25, %s683_s2  ;;  %p689_p11 = scmp.lt.s32.totalorder %s687_s5, %s683_s2 }
  0x51   : > { %p685_p4 = pnand %p684_p1, %p840_p3  ;;  %p690_p10 = por %p689_p11, %p688_p2 }
  0x53   : > { %p686_p8 = pneg %p685_p4 }
  0x55   : > { %295 = vadd.xlane.f32.xlu0 %v294_v3  ;;  %p691_p12 = pnand %p690_p10, %p686_p8 }
  0xc0   : > { %v287_v4 = vpop.xlane.xlu0 %286 }
  0xc1   : > { %v288_v5 = vrot.slane %v287_v4, 4 }
  0xc3   : > { %v289_v6 = vadd.f32 %v288_v5, %v287_v4 }
  0xc5   : > { %v290_v7 = vrot.slane %v289_v6, 2 }
  0xc7   : > { %v291_v8 = vadd.f32 %v290_v7, %v289_v6 }
  0xc8   : > { %v296_v9 = vpop.xlane.xlu0 %295 }
  0xc9   : > { %v292_v10 = vrot.slane %v291_v8, 1  ;;  %v297_v11 = vrot.slane %v296_v9, 4 }
  0xcb   : > { %v298_v12 = vadd.f32 %v297_v11, %v296_v9  ;;  %v293_v13 = vadd.f32 %v292_v10, %v291_v8 }
  0xcd   : > { %v299_v14 = vrot.slane %v298_v12, 2  ;;  %v303_v16 = vmul.f32 0.0009765625, %v293_v13 }
  0xcf   : > { %v300_v15 = vadd.f32 %v299_v14, %v298_v12  ;;  %v305_v19 = vmul.f32 %v303_v16, %v303_v16  ;;  %v321_v30 = vsub.f32 %v285_v2, %v303_v16 }
  0xd1   : > { %v301_v17 = vrot.slane %v300_v15, 1 }
  0xd3   : > { %v302_v18 = vadd.f32 %v301_v17, %v300_v15 }
  0xd5   : > { %v304_v20 = vmul.f32 0.0009765625, %v302_v18 }
  0xd7   : > { %v306_v21 = vsub.f32 %v304_v20, %v305_v19 }
  0xd9   : > { %v307_v22 = vmax.f32 %v306_v21, 0.0 }
  0xdb   : > { %v308_v23 = vadd.f32 1e-05, %v307_v22 }
  0xdd   : > { %545 = vrsqrt.f32 %v308_v23  ;;  %vm315_vm1 = vweird.f32 %v308_v23 }
  0xe3   : > { %v546_v24 = vpop.eup %545 }
  0xe4   : > { %v310_v25 = vmul.f32 %v546_v24, %v308_v23  ;;  %vm316_vm0 = vweird.f32 %v546_v24 }
  0xe5   : > { %vm317_vm2 = vmor %vm315_vm1, %vm316_vm0 }
  0xe6   : > { %v311_v26 = vmul.f32 %v546_v24, %v310_v25 }
  0xe8   : > { %v312_v27 = vmul.f32 0.5, %v311_v26 }
  0xea   : > { %v313_v28 = vsub.f32 1.5, %v312_v27 }
  0xec   : > { %v314_v29 = vmul.f32 %v546_v24, %v313_v28 }
  0xee   : > { %v318_v31 = vsel %vm317_vm2, %v546_v24, %v314_v29 }
  0xef   : > { %v322_v33 = vmul.f32 %v321_v30, %v318_v31 }
  0xf1   : > { %v323_v35 = vmul.f32 %v322_v33, %v319_v32 }
  0xf3   : > { %v324_v36 = vadd.f32 %v323_v35, %v320_v34 }
  0xf5   : > { %325 = vst [vmem:[%s282_s13] sm:$0xff] %v324_v36 }
  0xf6   : > { %694 = shalt.err (!%p691_p12)
}
  0xf7   : > { %485 = dma.vmem_to_hbm [thread:$0]  (%p840_p3), %s340_s20, 128, %s342_s24, %s327_s19  }
  0xf8 PF: > { %s353_s14 = sand.u32 1, %s733_s15   ;;  %p966_p13 = scmp.ge.s32.totalorder %s745_s18, 2 }
  0xf9   : > { %s354_s7 = scalar_lea.sflag [#allocation4], %s353_s14 }
  0xfa   : > { %p502_p9 = pnand %p966_p13, %p809_p6 }
  0xfc   : > { %p503_p0 = pneg %p502_p9 }
  0xfe   : > { %728 = dma.done.wait (%p503_p0), %s354_s7, 128  }
  0xff   : > { %730 = vsyncadd (%p503_p0), %s354_s7, 4294967168  ;;  %s967_s12 = sld [smem:[#allocation16_spill]]  ;;  %p21_p5 = scmp.ge.s32.totalorder %s830_s8, 4  }
 0x100   : > { %s968_s15 = smov %s737_s16  ;;  %s969_s16 = smov %s741_s17 }
 0x101   : > { %s971_s18 = smov %s830_s8  ;;  %23 = sbr.rel (!%p21_p5) target bundleno = 11 (0xb), region = 102 }
 0x105   : > { %s970_s17 = smov %s967_s12 }
 0x106   :  { %360 = vsyncpa [#allocation3], 1 }
 0x107   :  { %362 = vsyncpa [#allocation3 + $0x1], 1 }
 0x108   :  { %363 = vsyncpa [#allocation6], 1 }
 0x109   :  { %365 = vsyncpa [#allocation6 + $0x1], 1 }
 0x10a   :  { %366 = vsyncpa [#allocation9], 1 }
 0x10b   :  { %367 = vsyncpa [#allocation4], 1 }
 0x10c   :  { %369 = vsyncpa [#allocation4 + $0x1], 1 }

</bundles_post_ra>
